<compile_context>
chip_gen: v5e
topology: v5e:2x2
jax: 0.10.0
libtpu: 0.0.40
codegen_flags: <defaults>
</compile_context>

<pallas_src>
import functools

import jax
import jax.numpy as jnp
from jax import lax
from jax.experimental import pallas as pl
from jax.experimental.pallas import tpu as pltpu


def _round_up(a, b):
    return ((a + b - 1) // b) * b


def _patch_embed_ln_kernel(x_ref, w_ref, p_ref, o_ref, *, cout, eps):
    # x_ref: (tm, K_pad)       im2col patch rows (zero-padded K lanes)
    # w_ref: (K_pad, Cout_pad) flattened conv weight (zero-padded)
    # p_ref: (3, Cout_pad)     row 0 = conv bias, row 1 = LN gamma, row 2 = LN beta
    # o_ref: (tm, Cout_pad)    lane-dense output tile
    acc = jnp.dot(x_ref[...], w_ref[...], preferred_element_type=jnp.float32)
    bias = p_ref[0:1, :]
    gamma = p_ref[1:2, :]
    beta = p_ref[2:3, :]
    acc = acc + bias  # padded lanes stay exactly 0 (w and bias padded with 0)

    # LayerNorm over the true channel count (PyTorch semantics: biased variance,
    # eps inside the sqrt, elementwise affine). Padded lanes are masked out of
    # the variance; mean needs no mask because padded lanes are exactly zero.
    inv_c = 1.0 / cout
    mean = jnp.sum(acc, axis=-1, keepdims=True) * inv_c
    lane = lax.broadcasted_iota(jnp.int32, (1, acc.shape[-1]), 1)
    valid = lane < cout
    centered = acc - mean
    centered_m = jnp.where(valid, centered, 0.0)
    var = jnp.sum(centered_m * centered_m, axis=-1, keepdims=True) * inv_c
    normed = centered * lax.rsqrt(var + eps)
    # gamma/beta are zero in padded lanes, so padded output lanes are 0.
    o_ref[...] = (normed * gamma + beta).astype(o_ref.dtype)


def patch_embedding_forward(x, conv_w, conv_b, ln_g, ln_b, *, tm=1024):
    """x: (B, Cin, H, W) float32, NCHW like PyTorch.

    conv_w: (Cout, Cin, 4, 4); conv_b/ln_g/ln_b: (Cout,)
    Returns (B, Cout, H//4, W//4) float32 with the exact PyTorch forward
    semantics (including the raw reshape after LayerNorm).
    """
    B, Cin, H, W = x.shape
    Cout = conv_w.shape[0]
    assert H % 4 == 0 and W % 4 == 0
    Ho, Wo = H // 4, W // 4
    K = Cin * 16
    N = B * Ho * Wo

    K_pad = _round_up(K, 128)
    Cout_pad = _round_up(Cout, 128)

    # Row tile: multiple of 8 sublanes; pad N up to a multiple of it so the
    # pipelined path is always taken (no single-mega-block fallback).
    tm = max(8, (tm // 8) * 8)
    if N >= tm:
        tm_eff = tm
        n_pad = _round_up(N, tm)
    else:
        n_pad = _round_up(N, 8)
        tm_eff = n_pad

    # --- glue: extract 4x4 stride-4 patches, flatten to (N, K) matching the
    # row-major (Cin, kh, kw) layout of the flattened conv weight, then zero-pad
    # to lane-dense shapes. (allow_input_fusion below lets XLA fold this into
    # the kernel's input instead of a standalone HBM round trip.)
    xp = x.reshape(B, Cin, Ho, 4, Wo, 4)
    xp = xp.transpose(0, 2, 4, 1, 3, 5).reshape(N, K)
    xp = jnp.pad(xp, ((0, n_pad - N), (0, K_pad - K)))

    w_mat = conv_w.reshape(Cout, K).T  # (K, Cout)
    w_mat = jnp.pad(w_mat, ((0, K_pad - K), (0, Cout_pad - Cout)))

    params = jnp.stack([conv_b, ln_g, ln_b]).astype(jnp.float32)  # (3, Cout)
    params = jnp.pad(params, ((0, 0), (0, Cout_pad - Cout)))      # (3, Cout_pad)

    grid = (n_pad // tm_eff,)
    kernel = functools.partial(_patch_embed_ln_kernel, cout=Cout, eps=1e-5)

    out = pl.pallas_call(
        kernel,
        out_shape=jax.ShapeDtypeStruct((n_pad, Cout_pad), jnp.float32),
        grid_spec=pltpu.PrefetchScalarGridSpec(
            num_scalar_prefetch=0,
            grid=grid,
            in_specs=[
                pl.BlockSpec((tm_eff, K_pad), lambda i: (i, 0)),
                pl.BlockSpec((K_pad, Cout_pad), lambda i: (0, 0)),
                pl.BlockSpec((3, Cout_pad), lambda i: (0, 0)),
            ],
            out_specs=pl.BlockSpec((tm_eff, Cout_pad), lambda i: (i, 0)),
        ),
        compiler_params=pltpu.CompilerParams(
            dimension_semantics=("parallel",),
            vmem_limit_bytes=32 * 1024 * 1024,
            allow_input_fusion=[True, False, False],
        ),
    )(xp, w_mat, params)

    # Rows are ordered (b, ho, wo) -> (B, Ho*Wo, Cout): exactly the tensor after
    # flatten(2).permute(0,2,1) + LayerNorm in the PyTorch code.
    out = out[:N, :Cout].reshape(B, Ho * Wo, Cout)
    # Faithful reproduction of `x.reshape([B, C, H, W])` on that tensor
    # (row-major reinterpretation, NOT the inverse permute).
    out = out.reshape(B, Cout, Ho, Wo)
    return out


def _reference_forward(x, conv_w, conv_b, ln_g, ln_b):
    """Pure-JAX reference mirroring the PyTorch module, for verification."""
    y = lax.conv_general_dilated(
        x, conv_w, window_strides=(4, 4), padding="VALID",
        dimension_numbers=("NCHW", "OIHW", "NCHW"))
    y = y + conv_b.reshape(1, -1, 1, 1)
    B, C, H, W = y.shape
    z = y.reshape(B, C, H * W).transpose(0, 2, 1)      # (B, HW, C)
    mean = jnp.mean(z, axis=-1, keepdims=True)
    var = jnp.mean((z - mean) ** 2, axis=-1, keepdims=True)
    z = (z - mean) * lax.rsqrt(var + 1e-5) * ln_g + ln_b
    return z.reshape(B, C, H, W)


if __name__ == "__main__":
    key = jax.random.PRNGKey(0)
    B, Cin, H, W = 2, 4, 16, 16
    Cout = 32

    k_x, k_w, k_b, k_g, k_beta = jax.random.split(key, 5)
    x = jax.random.normal(k_x, (B, Cin, H, W), dtype=jnp.float32)
    conv_w = jax.random.normal(k_w, (Cout, Cin, 4, 4), dtype=jnp.float32) * 0.1
    conv_b = jax.random.normal(k_b, (Cout,), dtype=jnp.float32) * 0.1
    ln_g = jnp.ones((Cout,), dtype=jnp.float32) + 0.05 * jax.random.normal(
        k_g, (Cout,), dtype=jnp.float32)
    ln_b = 0.05 * jax.random.normal(k_beta, (Cout,), dtype=jnp.float32)

    out = patch_embedding_forward(x, conv_w, conv_b, ln_g, ln_b)
    out = jax.block_until_ready(out)

    ref = _reference_forward(x, conv_w, conv_b, ln_g, ln_b)
    assert out.shape == (B, Cout, H // 4, W // 4)
    assert jnp.allclose(out, ref, atol=1e-4, rtol=1e-4)

    print("KERNEL_OK")
</pallas_src>

<mosaic_0001>
module attributes {stable_mosaic.version = 11 : i64} {
  func.func @_patch_embed_ln_kernel(%arg0: i32, %arg1: memref<32x128xf32, #tpu.memory_space<vmem>>, %arg2: memref<128x128xf32, #tpu.memory_space<vmem>>, %arg3: memref<3x128xf32, #tpu.memory_space<vmem>>, %arg4: memref<32x128xf32, #tpu.memory_space<vmem>>) attributes {dimension_semantics = [#tpu.dimension_semantics<parallel>], iteration_bounds = array<i64: 1>, scalar_prefetch = 0 : i64, scratch_operands = 0 : i64, tpu.core_type = #tpu.core_type<tc>, window_params = [{transform_indices = @transform_0, window_bounds = array<i64: 32, 128>}, {pipeline_mode = #tpu.pipeline_mode<synchronous>, transform_indices = @transform_1, window_bounds = array<i64: 128, 128>}, {pipeline_mode = #tpu.pipeline_mode<synchronous>, transform_indices = @transform_2, window_bounds = array<i64: 3, 128>}, {transform_indices = @transform_3, window_bounds = array<i64: 32, 128>}]} {
    %c0 = arith.constant 0 : index
    %c0_0 = arith.constant 0 : index
    %0 = vector.load %arg1[%c0, %c0_0] : memref<32x128xf32, #tpu.memory_space<vmem>>, vector<32x128xf32>
    %c0_1 = arith.constant 0 : index
    %c0_2 = arith.constant 0 : index
    %1 = vector.load %arg2[%c0_1, %c0_2] : memref<128x128xf32, #tpu.memory_space<vmem>>, vector<128x128xf32>
    %cst = arith.constant dense<0.000000e+00> : vector<32x128xf32>
    %2 = tpu.matmul %0, %1, %cst {dimension_numbers = #tpu.dot_dimension_numbers<[1], [0], [0], [1], [0, 0, 1, 1], [], []>} : vector<32x128xf32>, vector<128x128xf32>, vector<32x128xf32> -> vector<32x128xf32>
    %c0_3 = arith.constant 0 : index
    %c0_4 = arith.constant 0 : index
    %3 = vector.load %arg3[%c0_3, %c0_4] : memref<3x128xf32, #tpu.memory_space<vmem>>, vector<1x128xf32>
    %c1 = arith.constant 1 : index
    %c0_5 = arith.constant 0 : index
    %4 = vector.load %arg3[%c1, %c0_5] : memref<3x128xf32, #tpu.memory_space<vmem>>, vector<1x128xf32>
    %c2 = arith.constant 2 : index
    %c0_6 = arith.constant 0 : index
    %5 = vector.load %arg3[%c2, %c0_6] : memref<3x128xf32, #tpu.memory_space<vmem>>, vector<1x128xf32>
    %6 = vector.broadcast %3 : vector<1x128xf32> to vector<32x128xf32>
    %7 = arith.addf %2, %6 : vector<32x128xf32>
    %cst_7 = arith.constant dense<0.000000e+00> : vector<32xf32>
    %8 = vector.multi_reduction <add>, %7, %cst_7 [1] : vector<32x128xf32> to vector<32xf32>
    %9 = vector.shape_cast %8 : vector<32xf32> to vector<32x1xf32>
    %cst_8 = arith.constant 3.125000e-02 : f32
    %10 = vector.broadcast %cst_8 : f32 to vector<32x1xf32>
    %11 = arith.mulf %9, %10 : vector<32x1xf32>
    %12 = tpu.iota {dimensions = array<i32: 1>} : vector<1x128xi32>
    %c32_i32 = arith.constant 32 : i32
    %13 = vector.broadcast %c32_i32 : i32 to vector<1x128xi32>
    %14 = arith.cmpi slt, %12, %13 : vector<1x128xi32>
    %15 = vector.broadcast %11 : vector<32x1xf32> to vector<32x128xf32>
    %16 = arith.subf %7, %15 : vector<32x128xf32>
    %cst_9 = arith.constant 0.000000e+00 : f32
    %17 = vector.shape_cast %14 : vector<1x128xi1> to vector<1x128xi1>
    %18 = vector.broadcast %17 : vector<1x128xi1> to vector<32x128xi1>
    %19 = vector.broadcast %cst_9 : f32 to vector<32x128xf32>
    %20 = arith.select %18, %16, %19 : vector<32x128xi1>, vector<32x128xf32>
    %21 = arith.mulf %20, %20 : vector<32x128xf32>
    %cst_10 = arith.constant dense<0.000000e+00> : vector<32xf32>
    %22 = vector.multi_reduction <add>, %21, %cst_10 [1] : vector<32x128xf32> to vector<32xf32>
    %23 = vector.shape_cast %22 : vector<32xf32> to vector<32x1xf32>
    %cst_11 = arith.constant 3.125000e-02 : f32
    %24 = vector.broadcast %cst_11 : f32 to vector<32x1xf32>
    %25 = arith.mulf %23, %24 : vector<32x1xf32>
    %cst_12 = arith.constant 9.99999974E-6 : f32
    %26 = vector.broadcast %cst_12 : f32 to vector<32x1xf32>
    %27 = arith.addf %25, %26 : vector<32x1xf32>
    %28 = math.rsqrt %27 : vector<32x1xf32>
    %29 = vector.broadcast %28 : vector<32x1xf32> to vector<32x128xf32>
    %30 = arith.mulf %16, %29 : vector<32x128xf32>
    %31 = vector.broadcast %4 : vector<1x128xf32> to vector<32x128xf32>
    %32 = arith.mulf %30, %31 : vector<32x128xf32>
    %33 = vector.broadcast %5 : vector<1x128xf32> to vector<32x128xf32>
    %34 = arith.addf %32, %33 : vector<32x128xf32>
    %c0_13 = arith.constant 0 : index
    %c0_14 = arith.constant 0 : index
    %35 = vector.load %arg4[%c0_13, %c0_14] : memref<32x128xf32, #tpu.memory_space<vmem>>, vector<32x128xf32>
    tpu.vector_store %arg4[%c0_13, %c0_14], %34 {strides = array<i32>} : memref<32x128xf32, #tpu.memory_space<vmem>>, vector<32x128xf32>,
    return
  }
  func.func @transform_0(%arg0: i32) -> (i32, i32) {
    %c0_i32 = arith.constant 0 : i32
    %c0_i32_0 = arith.constant 0 : i32
    return %arg0, %c0_i32 : i32, i32
  }
  func.func @transform_1(%arg0: i32) -> (i32, i32) {
    %c0_i32 = arith.constant 0 : i32
    %c0_i32_0 = arith.constant 0 : i32
    %c0_i32_1 = arith.constant 0 : i32
    return %c0_i32, %c0_i32_0 : i32, i32
  }
  func.func @transform_2(%arg0: i32) -> (i32, i32) {
    %c0_i32 = arith.constant 0 : i32
    %c0_i32_0 = arith.constant 0 : i32
    %c0_i32_1 = arith.constant 0 : i32
    return %c0_i32, %c0_i32_0 : i32, i32
  }
  func.func @transform_3(%arg0: i32) -> (i32, i32) {
    %c0_i32 = arith.constant 0 : i32
    %c0_i32_0 = arith.constant 0 : i32
    return %arg0, %c0_i32 : i32, i32
  }
}

</mosaic_0001>

<bundles_post_ra>
// kernel: tpu_custom_call.1
= control target key start
LH: loop header
LB: loop body
LE: loop exit
PB: predicated region body
PF: predicated region fallthrough
CT: control target
= control target key end

     0   :  { %8 = vsyncpa [#allocation3], 0  ;;  %s466_s0 = inlined_call_operand.hbm [shape: f32[32,128], index: 0, kind: input, shape index: {}]   ;;  %s467_s1 = inlined_call_operand.hbm [shape: f32[128,128], index: 1, kind: input, shape index: {}]   ;;  %s468_s2 = inlined_call_operand.hbm [shape: f32[3,128], index: 2, kind: input, shape index: {}]   ;;  %s469_s3 = inlined_call_operand.hbm [shape: f32[32,128], index: 3, kind: output, shape index: {}]  }
   0x1   :  { %9 = vsyncpa [#allocation6], 0 }
   0x2   :  { %10 = vsyncpa [#allocation4], 0  ;;  %s28_s14 = sshll.u32 %s467_s1, 4  ;;  %s403_s15 = smov [#allocation5]   ;;  %s29_s14 = int_to_ptr.hbm [resolvable:$true] %s28_s14 }
   0x3   :  { %s30_s16 = sshll.u32 %s403_s15, 4  ;;  %s15_s19 = sshll.u32 %s466_s0, 4  ;;  %s31_s16 = int_to_ptr.vmem [resolvable:$true] %s30_s16  ;;  %s16_s19 = int_to_ptr.hbm [resolvable:$true] %s15_s19 }
   0x4   :  { %s404_s20 = smov 128   ;;  %s405_s21 = smov 8  }
   0x5   :  { %36 = dma.hbm_to_vmem [thread:$0]  %s29_s14, 2048, %s31_s16, [#allocation6], %s404_s20, %s404_s20, %s405_s21  }
   0x6   :  { %s406_s22 = smov [#allocation2]   ;;  %s42_s1 = sshll.u32 %s468_s2, 4  ;;  %s43_s1 = int_to_ptr.hbm [resolvable:$true] %s42_s1 }
   0x7   :  { %s17_s23 = sshll.u32 %s406_s22, 4  ;;  %s407_s0 = smov [#allocation7]   ;;  %s18_s23 = int_to_ptr.vmem [resolvable:$true] %s17_s23 }
   0x8   :  { %23 = dma.hbm_to_vmem [thread:$0]  %s16_s19, 512, %s18_s23, [#allocation3], %s404_s20, %s404_s20, %s405_s21  }
   0x9   :  { %s44_s26 = sshll.u32 %s407_s0, 4  ;;  %s45_s26 = int_to_ptr.vmem [resolvable:$true] %s44_s26 }
   0xa   :  { %47 = dma.hbm_to_vmem [thread:$0]  %s43_s1, 64, %s45_s26, [#allocation6]  }
   0xb   :  { %397 = dma.done.wait [#allocation3], 512  }
   0xc   :  { %398 = vsyncadd [#allocation3], 4294966784 }
   0xd   :  { %399 = dma.done.wait [#allocation6], 2112  }
   0xe   :  { %400 = vsyncadd [#allocation6], 4294965184  ;;  %v79_v0 = vld [vmem:[#allocation5 + $0x78] sm:$0xff]  ;;  %v78_v1 = vld [vmem:[#allocation5 + $0x70] sm:$0xff]  ;;  %v125_v29 = vlaneseq  ;;  %s408_s2 = smov [#allocation8]   ;;  %s222_s30 = sshll.u32 %s469_s3, 4  ;;  %s223_s30 = int_to_ptr.hbm [resolvable:$true] %s222_s30 }
   0xf   :  { %84 = vmatpush.msra.mxu0 %v79_v0  ;;  %237 = vmatpush.msra.mxu2 %v79_v0  ;;  %v77_v2 = vld [vmem:[#allocation5 + $0x68] sm:$0xff]  ;;  %v76_v3 = vld [vmem:[#allocation5 + $0x60] sm:$0xff]  ;;  %v75_v4 = vld [vmem:[#allocation5 + $0x58] sm:$0xff]  ;;  %s220_s27 = sshll.u32 %s408_s2, 4  ;;  %s221_s27 = int_to_ptr.vmem [resolvable:$true] %s220_s27 }
  0x10   :  { %236 = vmatpush.msra.mxu1 %v79_v0  ;;  %238 = vmatpush.msra.mxu3 %v79_v0  ;;  %v74_v5 = vld [vmem:[#allocation5 + $0x50] sm:$0xff]  ;;  %v73_v6 = vld [vmem:[#allocation5 + $0x48] sm:$0xff]  ;;  %v72_v7 = vld [vmem:[#allocation5 + $0x40] sm:$0xff]  ;;  %v126_v30 = vand.u32 127, %v125_v29 }
  0x11   :  { %85 = vmatpush.msra.mxu0 %v78_v1  ;;  %240 = vmatpush.msra.mxu2 %v78_v1  ;;  %v71_v8 = vld [vmem:[#allocation5 + $0x38] sm:$0xff]  ;;  %v70_v9 = vld [vmem:[#allocation5 + $0x30] sm:$0xff]  ;;  %v69_v10 = vld [vmem:[#allocation5 + $0x28] sm:$0xff] }
  0x12   :  { %239 = vmatpush.msra.mxu1 %v78_v1  ;;  %241 = vmatpush.msra.mxu3 %v78_v1  ;;  %v68_v11 = vld [vmem:[#allocation5 + $0x20] sm:$0xff]  ;;  %v67_v12 = vld [vmem:[#allocation5 + $0x18] sm:$0xff]  ;;  %v66_v13 = vld [vmem:[#allocation5 + $0x10] sm:$0xff]  ;;  %vm127_vm0 = vcmp.lt.s32.totalorder %v126_v30, 32 }
  0x13   :  { %86 = vmatpush.msra.mxu0 %v77_v2  ;;  %243 = vmatpush.msra.mxu2 %v77_v2  ;;  %v65_v14 = vld [vmem:[#allocation5 + $0x8] sm:$0xff]  ;;  %v64_v15 = vld [vmem:[#allocation5] sm:$0xff]  ;;  %v62_v17 = vld [vmem:[#allocation2 + $0x10] sm:$0xff] }
  0x14   :  { %242 = vmatpush.msra.mxu1 %v77_v2  ;;  %244 = vmatpush.msra.mxu3 %v77_v2  ;;  %v60_v16 = vld [vmem:[#allocation2] sm:$0xff]  ;;  %v61_v18 = vld [vmem:[#allocation2 + $0x8] sm:$0xff]  ;;  %v63_v19 = vld [vmem:[#allocation2 + $0x18] sm:$0xff] }
  0x15   :  { %87 = vmatpush.msra.mxu0 %v76_v3  ;;  %246 = vmatpush.msra.mxu2 %v76_v3  ;;  %v290_v20 = vld [vmem:[#allocation7] ss:$0 sm:$0xff] }
  0x16   :  { %245 = vmatpush.msra.mxu1 %v76_v3  ;;  %247 = vmatpush.msra.mxu3 %v76_v3 }
  0x17   :  { %88 = vmatpush.msra.mxu0 %v75_v4  ;;  %249 = vmatpush.msra.mxu2 %v75_v4 }
  0x18   :  { %248 = vmatpush.msra.mxu1 %v75_v4  ;;  %250 = vmatpush.msra.mxu3 %v75_v4 }
  0x19   :  { %89 = vmatpush.msra.mxu0 %v74_v5  ;;  %252 = vmatpush.msra.mxu2 %v74_v5 }
  0x1a   :  { %251 = vmatpush.msra.mxu1 %v74_v5  ;;  %253 = vmatpush.msra.mxu3 %v74_v5 }
  0x1b   :  { %90 = vmatpush.msra.mxu0 %v73_v6  ;;  %255 = vmatpush.msra.mxu2 %v73_v6 }
  0x1c   :  { %254 = vmatpush.msra.mxu1 %v73_v6  ;;  %256 = vmatpush.msra.mxu3 %v73_v6 }
  0x1d   :  { %91 = vmatpush.msra.mxu0 %v72_v7  ;;  %258 = vmatpush.msra.mxu2 %v72_v7 }
  0x1e   :  { %257 = vmatpush.msra.mxu1 %v72_v7  ;;  %259 = vmatpush.msra.mxu3 %v72_v7 }
  0x1f   :  { %92 = vmatpush.msra.mxu0 %v71_v8  ;;  %261 = vmatpush.msra.mxu2 %v71_v8 }
  0x20   :  { %260 = vmatpush.msra.mxu1 %v71_v8  ;;  %262 = vmatpush.msra.mxu3 %v71_v8 }
  0x21   :  { %93 = vmatpush.msra.mxu0 %v70_v9  ;;  %264 = vmatpush.msra.mxu2 %v70_v9 }
  0x22   :  { %263 = vmatpush.msra.mxu1 %v70_v9  ;;  %265 = vmatpush.msra.mxu3 %v70_v9 }
  0x23   :  { %94 = vmatpush.msra.mxu0 %v69_v10  ;;  %267 = vmatpush.msra.mxu2 %v69_v10 }
  0x24   :  { %266 = vmatpush.msra.mxu1 %v69_v10  ;;  %268 = vmatpush.msra.mxu3 %v69_v10  ;;  %v291_v10 = vld [vmem:[#allocation7 + $0x1] ss:$0 sm:$0xff] }
  0x25   :  { %95 = vmatpush.msra.mxu0 %v68_v11  ;;  %270 = vmatpush.msra.mxu2 %v68_v11 }
  0x26   :  { %269 = vmatpush.msra.mxu1 %v68_v11  ;;  %271 = vmatpush.msra.mxu3 %v68_v11 }
  0x27   :  { %96 = vmatpush.msra.mxu0 %v67_v12  ;;  %273 = vmatpush.msra.mxu2 %v67_v12 }
  0x28   :  { %272 = vmatpush.msra.mxu1 %v67_v12  ;;  %274 = vmatpush.msra.mxu3 %v67_v12 }
  0x29   :  { %97 = vmatpush.msra.mxu0 %v66_v13  ;;  %276 = vmatpush.msra.mxu2 %v66_v13 }
  0x2a   :  { %275 = vmatpush.msra.mxu1 %v66_v13  ;;  %277 = vmatpush.msra.mxu3 %v66_v13 }
  0x2b   :  { %98 = vmatpush.msra.mxu0 %v65_v14  ;;  %279 = vmatpush.msra.mxu2 %v65_v14 }
  0x2c   :  { %278 = vmatpush.msra.mxu1 %v65_v14  ;;  %280 = vmatpush.msra.mxu3 %v65_v14 }
  0x2d   :  { %99 = vmatpush.msra.mxu0 %v64_v15  ;;  %282 = vmatpush.msra.mxu2 %v64_v15 }
  0x2e   :  { %100 = vmatmul.f32.vlgmr.msra.gmra.mxu0 %v60_v16  ;;  %106 = vmatmul.f32.vlgmr.msra.gmra.mxu2 %v62_v17 }
  0x2f   :  { %281 = vmatpush.msra.mxu1 %v64_v15  ;;  %283 = vmatpush.msra.mxu3 %v64_v15  ;;  %v292_v15 = vld [vmem:[#allocation7 + $0x2] ss:$0 sm:$0xff] }
  0x30   :  { %103 = vmatmul.f32.vlgmr.msra.gmra.mxu1 %v61_v18  ;;  %109 = vmatmul.f32.vlgmr.msra.gmra.mxu3 %v63_v19 }
  0xab   :  { %v101_v21 = vpop.f32.mrf.mxu0 }
  0xac   :  { %v102_v22 = vadd.f32 %v290_v20, %v101_v21 }
  0xad   :  { %v104_v23 = vpop.f32.mrf.mxu1 }
  0xae   :  { %113 = vadd.xlane.f32.xlu0 %v102_v22  ;;  %v105_v26 = vadd.f32 %v290_v20, %v104_v23 }
  0xb1   :  { %v107_v24 = vpop.f32.mrf.mxu2 }
  0xb2   :  { %v108_v25 = vadd.f32 %v290_v20, %v107_v24 }
  0xb3   :  { %v110_v27 = vpop.f32.mrf.mxu3 }
  0xb4   :  { %117 = vadd.xlane.f32.xlu1 %v108_v25  ;;  %v111_v28 = vadd.f32 %v290_v20, %v110_v27 }
  0xb6   :  { %115 = vadd.xlane.f32.xlu0 %v105_v26 }
  0xbc   :  { %119 = vadd.xlane.f32.xlu1 %v111_v28 }
 0x121   :  { %v114_v31 = vpop.xlane.xlu0 %113 }
 0x122   :  { %v121_v32 = vmul.f32 0.03125, %v114_v31 }
 0x124   :  { %v128_v33 = vsub.f32 %v102_v22, %v121_v32 }
 0x126   :  { %v134_v34 = vsel %vm127_vm0, %v128_v33, 0.0 }
 0x127   :  { %v118_v35 = vpop.xlane.xlu1 %117  ;;  %v138_v36 = vmul.f32 %v134_v34, %v134_v34 }
 0x128   :  { %v123_v37 = vmul.f32 0.03125, %v118_v35 }
 0x129   :  { %142 = vadd.xlane.f32.xlu2 %v138_v36  ;;  %v116_v38 = vpop.xlane.xlu0 %115 }
 0x12a   :  { %v445_v39 = vsub.f32 %v108_v25, %v123_v37  ;;  %v122_v40 = vmul.f32 0.03125, %v116_v38 }
 0x12c   :  { %v447_v41 = vsub.f32 %v105_v26, %v122_v40  ;;  %v136_v42 = vsel %vm127_vm0, %v445_v39, 0.0 }
 0x12d   :  { %v140_v43 = vmul.f32 %v136_v42, %v136_v42 }
 0x12e   :  { %v135_v44 = vsel %vm127_vm0, %v447_v41, 0.0 }
 0x12f   :  { %v120_v45 = vpop.xlane.xlu1 %119  ;;  %146 = vadd.xlane.f32.xlu0 %v140_v43  ;;  %v139_v46 = vmul.f32 %v135_v44, %v135_v44 }
 0x130   :  { %v124_v47 = vmul.f32 0.03125, %v120_v45 }
 0x131   :  { %144 = vadd.xlane.f32.xlu2 %v139_v46 }
 0x132   :  { %v453_v48 = vsub.f32 %v111_v28, %v124_v47 }
 0x134   :  { %v137_v49 = vsel %vm127_vm0, %v453_v48, 0.0 }
 0x135   :  { %v141_v50 = vmul.f32 %v137_v49, %v137_v49 }
 0x137   :  { %148 = vadd.xlane.f32.xlu1 %v141_v50 }
 0x19c   :  { %v143_v51 = vpop.xlane.xlu2 %142 }
 0x19d   :  { %v150_v52 = vmul.f32 0.03125, %v143_v51 }
 0x19f   :  { %v154_v53 = vadd.f32 1e-05, %v150_v52 }
 0x1a1   :  { %293 = vrsqrt.f32 %v154_v53  ;;  %vm164_vm2 = vweird.f32 %v154_v53 }
 0x1a2   :  { %v147_v54 = vpop.xlane.xlu0 %146 }
 0x1a3   :  { %v152_v55 = vmul.f32 0.03125, %v147_v54 }
 0x1a4   :  { %v145_v56 = vpop.xlane.xlu2 %144 }
 0x1a5   :  { %v156_v57 = vadd.f32 1e-05, %v152_v55  ;;  %v151_v58 = vmul.f32 0.03125, %v145_v56 }
 0x1a7   :  { %v294_v59 = vpop.eup %293  ;;  %295 = vrsqrt.f32 %v156_v57  ;;  %v155_v60 = vadd.f32 1e-05, %v151_v58  ;;  %vm184_vm5 = vweird.f32 %v156_v57 }
 0x1a8   :  { %v159_v61 = vmul.f32 %v294_v59, %v154_v53  ;;  %vm165_vm1 = vweird.f32 %v294_v59 }
 0x1a9   :  { %297 = vrsqrt.f32 %v155_v60  ;;  %vm166_vm3 = vmor %vm164_vm2, %vm165_vm1  ;;  %vm174_vm8 = vweird.f32 %v155_v60 }
 0x1aa   :  { %v160_v62 = vmul.f32 %v294_v59, %v159_v61  ;;  %v149_v63 = vpop.xlane.xlu1 %148 }
 0x1ab   :  { %v153_v0 = vmul.f32 0.03125, %v149_v63 }
 0x1ac   :  { %v161_v1 = vmul.f32 0.5, %v160_v62 }
 0x1ad   :  { %v296_v2 = vpop.eup %295  ;;  %v157_v3 = vadd.f32 1e-05, %v153_v0 }
 0x1ae   :  { %v162_v4 = vsub.f32 1.5, %v161_v1  ;;  %v179_v5 = vmul.f32 %v296_v2, %v156_v57  ;;  %vm185_vm4 = vweird.f32 %v296_v2 }
 0x1af   :  { %v298_v6 = vpop.eup %297  ;;  %299 = vrsqrt.f32 %v157_v3  ;;  %vm186_vm7 = vmor %vm184_vm5, %vm185_vm4  ;;  %vm194_vm11 = vweird.f32 %v157_v3 }
 0x1b0   :  { %v163_v7 = vmul.f32 %v294_v59, %v162_v4  ;;  %v180_v8 = vmul.f32 %v296_v2, %v179_v5  ;;  %v169_v9 = vmul.f32 %v298_v6, %v155_v60  ;;  %vm175_vm6 = vweird.f32 %v298_v6 }
 0x1b1   :  { %vm176_vm9 = vmor %vm174_vm8, %vm175_vm6 }
 0x1b2   :  { %v167_v11 = vsel %vm166_vm3, %v294_v59, %v163_v7  ;;  %v181_v12 = vmul.f32 0.5, %v180_v8  ;;  %v170_v13 = vmul.f32 %v298_v6, %v169_v9 }
 0x1b3   :  { %v198_v14 = vmul.f32 %v167_v11, %v128_v33 }
 0x1b4   :  { %v182_v16 = vsub.f32 1.5, %v181_v12  ;;  %v171_v17 = vmul.f32 0.5, %v170_v13 }
 0x1b5   :  { %v300_v18 = vpop.eup %299  ;;  %v203_v19 = vmul.f32 %v291_v10, %v198_v14 }
 0x1b6   :  { %v183_v20 = vmul.f32 %v296_v2, %v182_v16  ;;  %v172_v21 = vsub.f32 1.5, %v171_v17  ;;  %v189_v22 = vmul.f32 %v300_v18, %v157_v3  ;;  %vm195_vm10 = vweird.f32 %v300_v18 }
 0x1b7   :  { %v208_v23 = vadd.f32 %v292_v15, %v203_v19  ;;  %vm196_vm12 = vmor %vm194_vm11, %vm195_vm10 }
 0x1b8   :  { %v187_v24 = vsel %vm186_vm7, %v296_v2, %v183_v20  ;;  %v173_v25 = vmul.f32 %v298_v6, %v172_v21  ;;  %v190_v26 = vmul.f32 %v300_v18, %v189_v22 }
 0x1b9   :  { %v200_v27 = vmul.f32 %v187_v24, %v445_v39  ;;  %212 = vst [vmem:[#allocation8] sm:$0xff] %v208_v23 }
 0x1ba   :  { %v177_v28 = vsel %vm176_vm9, %v298_v6, %v173_v25  ;;  %v191_v29 = vmul.f32 0.5, %v190_v26 }
 0x1bb   :  { %v205_v30 = vmul.f32 %v291_v10, %v200_v27  ;;  %v199_v31 = vmul.f32 %v177_v28, %v447_v41 }
 0x1bc   :  { %v192_v32 = vsub.f32 1.5, %v191_v29 }
 0x1bd   :  { %v210_v33 = vadd.f32 %v292_v15, %v205_v30  ;;  %v204_v34 = vmul.f32 %v291_v10, %v199_v31 }
 0x1be   :  { %v193_v35 = vmul.f32 %v300_v18, %v192_v32 }
 0x1bf   :  { %214 = vst [vmem:[#allocation8 + $0x10] sm:$0xff] %v210_v33  ;;  %v209_v36 = vadd.f32 %v292_v15, %v204_v34 }
 0x1c0   :  { %v197_v37 = vsel %vm196_vm12, %v300_v18, %v193_v35 }
 0x1c1   :  { %213 = vst [vmem:[#allocation8 + $0x8] sm:$0xff] %v209_v36  ;;  %v201_v38 = vmul.f32 %v197_v37, %v453_v48 }
 0x1c3   :  { %v206_v39 = vmul.f32 %v291_v10, %v201_v38 }
 0x1c5   :  { %v211_v40 = vadd.f32 %v292_v15, %v206_v39 }
 0x1c7   :  { %215 = vst [vmem:[#allocation8 + $0x18] sm:$0xff] %v211_v40 }
 0x1c8   :  { %228 = dma.vmem_to_hbm [thread:$0]  %s221_s27, 512, %s223_s30, [#allocation4], %s404_s20, %s404_s20, %s405_s21  }
 0x1c9   :  { %401 = dma.done.wait [#allocation4], 512  }
 0x1ca   :  { %402 = vsyncadd [#allocation4], 4294966784 }
 0x1cb   :  { %233 = vsyncpa [#allocation3], 1 }
 0x1cc   :  { %234 = vsyncpa [#allocation6], 1 }
 0x1cd   :  { %235 = vsyncpa [#allocation4], 1 }

</bundles_post_ra>
